<compile_context>
chip_gen: v7x
topology: tpu7x:2x2x1
jax: 0.10.0
libtpu: 0.0.40
codegen_flags: <defaults>
</compile_context>

<pallas_src>
import math

import jax
import jax.numpy as jnp
from jax.experimental import pallas as pl
from jax.experimental.pallas import tpu as pltpu


def _modal_drop_kernel(drop_ref, x_hbm_ref, o_hbm_ref, zeros_ref, sem):
    # drop_ref:  (B,) int32 in SMEM (scalar prefetch); nonzero => zero sample.
    # x_hbm_ref: (B, nF, TF) in HBM, aliased with o_hbm_ref (never read here).
    # o_hbm_ref: (B, nF, TF) in HBM; only dropped slabs are written.
    # zeros_ref: (1, 1, TF) VMEM staging buffer for the zero write.
    # sem:       DMA completion semaphore.
    del x_hbm_ref  # data is already in place thanks to input/output aliasing
    b = pl.program_id(0)
    t = pl.program_id(1)

    @pl.when(drop_ref[b] != 0)
    def _zero_slab():
        zeros_ref[...] = jnp.zeros_like(zeros_ref)
        cp = pltpu.make_async_copy(
            zeros_ref,
            o_hbm_ref.at[pl.ds(b, 1), pl.ds(t, 1), :],
            sem,
        )
        cp.start()
        cp.wait()


def _pick_tile(f, max_elems=128 * 1024):
    """Largest divisor of f that is <= max_elems (bounds the VMEM scratch)."""
    cap = max(1, min(f, max_elems))
    for d in range(cap, 0, -1):
        if f % d == 0:
            return d
    return 1


@jax.jit
def _apply_modal_drop(x, drop_b):
    """Return x with x[b] set to exact zeros for every b with drop_b[b] != 0."""
    batch = x.shape[0]
    f = math.prod(x.shape[1:])
    tf = _pick_tile(f)
    nf = f // tf
    x3 = x.reshape(batch, nf, tf)  # free row-major view

    out = pl.pallas_call(
        _modal_drop_kernel,
        out_shape=jax.ShapeDtypeStruct((batch, nf, tf), x.dtype),
        grid_spec=pltpu.PrefetchScalarGridSpec(
            num_scalar_prefetch=1,
            grid=(batch, nf),
            in_specs=[pl.BlockSpec(memory_space=pl.ANY)],   # stays in HBM
            out_specs=pl.BlockSpec(memory_space=pl.ANY),    # stays in HBM
            scratch_shapes=[
                pltpu.VMEM((1, 1, tf), x.dtype),
                pltpu.SemaphoreType.DMA,
            ],
        ),
        # Donate the (reshaped) input buffer to the output: kept samples are
        # never read or re-written by the kernel.
        input_output_aliases={1: 0},
        compiler_params=pltpu.CompilerParams(
            # Sparse zero-writes make the kernel overhead-bound, not
            # bandwidth-bound, so sequential grid semantics are fine and keep
            # the conditional manual-DMA path simple on megacore parts.
            dimension_semantics=("arbitrary", "arbitrary"),
        ),
    )(drop_b, x3)
    return out.reshape(x.shape)


def modal_dropout_block(input_modals, key, probability=0.1):
    """JAX/Pallas equivalent of ModalDropoutBlock.forward.

    Args:
      input_modals: list of arrays, each (B, ...); batch dims must match.
      key:          jax PRNGKey driving the random sample/modality selection.
      probability:  per-sample drop probability.

    Returns:
      list of arrays with the same shapes/dtypes; for each selected sample,
      one randomly chosen modality has that sample zeroed out.
    """
    if not input_modals:
        return input_modals

    num_modals = len(input_modals)
    batch = input_modals[0].shape[0]

    # Random selection glue (plain JAX): matches torch.rand(B) <= p and
    # torch.randint(0, num_modals, ...).
    k_sel, k_mod = jax.random.split(key)
    selected = jax.random.uniform(k_sel, (batch,)) <= probability
    modal_idx = jax.random.randint(k_mod, (batch,), 0, num_modals)

    outs = []
    for m, x in enumerate(input_modals):
        drop_m = (selected & (modal_idx == m)).astype(jnp.int32)
        outs.append(_apply_modal_drop(x, drop_m))
    return outs


if __name__ == "__main__":
    key = jax.random.PRNGKey(0)
    k_rgb, k_th, k_drop = jax.random.split(key, 3)

    B, C, H, W = 2, 4, 16, 16
    rgb = jax.random.normal(k_rgb, (B, C, H, W), dtype=jnp.float32)
    thermal = jax.random.normal(k_th, (B, C, H, W), dtype=jnp.float32)
    # Plant an inf to verify dropped slabs become exact zeros (not inf * 0).
    rgb = rgb.at[0, 0, 0, 0].set(jnp.inf)
    modals = [rgb, thermal]

    # High probability so dropping actually happens at this tiny batch.
    probability = 0.6
    out_modals = modal_dropout_block(modals, k_drop, probability=probability)
    out_modals = [jax.block_until_ready(o) for o in out_modals]

    # Pure-JAX reference using the identical random draws.
    k_sel, k_mod = jax.random.split(k_drop)
    selected = jax.random.uniform(k_sel, (B,)) <= probability
    modal_idx = jax.random.randint(k_mod, (B,), 0, len(modals))
    ref = [m for m in modals]
    for b in range(B):
        if bool(selected[b]):
            mi = int(modal_idx[b])
            ref[mi] = ref[mi].at[b].set(0.0)

    for got, exp in zip(out_modals, ref):
        assert got.shape == exp.shape and got.dtype == exp.dtype
        assert bool(jnp.array_equal(got, exp)), "mismatch vs reference"

    print("KERNEL_OK")
</pallas_src>

<mosaic_0001>
module attributes {stable_mosaic.version = 11 : i64} {
  func.func @_modal_drop_kernel(%arg0: i32, %arg1: i32, %arg2: memref<2xi32, #tpu.memory_space<smem>>, %arg3: memref<2x1x1024xf32, #tpu.memory_space<any>>, %arg4: memref<2x1x1024xf32, #tpu.memory_space<any>>, %arg5: memref<1x1x1024xf32, #tpu.memory_space<vmem>>, %arg6: memref<!tpu.dma_semaphore, #tpu.memory_space<semaphore_mem>>) attributes {dimension_semantics = [#tpu.dimension_semantics<arbitrary>, #tpu.dimension_semantics<arbitrary>], iteration_bounds = array<i64: 2, 1>, scalar_prefetch = 1 : i64, scratch_operands = 2 : i64, tpu.core_type = #tpu.core_type<tc>, window_params = [{}, {}]} {
    %0 = arith.index_cast %arg0 : i32 to index
    %1 = memref.load %arg2[%0] : memref<2xi32, #tpu.memory_space<smem>>
    %c0_i32 = arith.constant 0 : i32
    %2 = arith.cmpi ne, %1, %c0_i32 : i32
    %3 = arith.extui %2 : i1 to i32
    %c0_i32_0 = arith.constant 0 : i32
    %4 = arith.cmpi ne, %3, %c0_i32_0 : i32
    scf.if %4 {
      %cst = arith.constant 0.000000e+00 : f32
      %5 = vector.broadcast %cst : f32 to vector<1x1x1024xf32>
      %c0 = arith.constant 0 : index
      %c0_1 = arith.constant 0 : index
      %c0_2 = arith.constant 0 : index
      %6 = vector.load %arg5[%c0, %c0_1, %c0_2] : memref<1x1x1024xf32, #tpu.memory_space<vmem>>, vector<1x1x1024xf32>
      tpu.vector_store %arg5[%c0, %c0_1, %c0_2], %5 {strides = array<i32>} : memref<1x1x1024xf32, #tpu.memory_space<vmem>>, vector<1x1x1024xf32>,
      %c0_i32_3 = arith.constant 0 : i32
      %7 = tpu.memref_slice %arg4[%arg0, %arg1, %c0_i32_3] : memref<2x1x1024xf32, #tpu.memory_space<any>> -> memref<1x1x1024xf32, #tpu.memory_space<any>>
      tpu.enqueue_dma source(%arg5 : memref<1x1x1024xf32, #tpu.memory_space<vmem>>) target(%7 : memref<1x1x1024xf32, #tpu.memory_space<any>>) target_semaphore(%arg6 : memref<!tpu.dma_semaphore, #tpu.memory_space<semaphore_mem>>)
      %c0_i32_4 = arith.constant 0 : i32
      %8 = tpu.memref_slice %arg4[%arg0, %arg1, %c0_i32_4] : memref<2x1x1024xf32, #tpu.memory_space<any>> -> memref<1x1x1024xf32, #tpu.memory_space<any>>
      tpu.wait_dma2 semaphore(%arg6 : memref<!tpu.dma_semaphore, #tpu.memory_space<semaphore_mem>>) src(%arg5 : memref<1x1x1024xf32, #tpu.memory_space<vmem>>) dst(%8 : memref<1x1x1024xf32, #tpu.memory_space<any>>)
    } else {
    }
    return
  }
}

</mosaic_0001>

<bundles_post_ra>
// kernel: _apply_modal_drop.1
= control target key start
LH: loop header
LB: loop body
LE: loop exit
PB: predicated region body
PF: predicated region fallthrough
CT: control target
= control target key end

     0   :  { %s186_s0 = inlined_call_operand.vmem [shape: s32[2], index: 0, kind: input, shape index: {}]   ;;  %s187_s1 = inlined_call_operand.vmem [shape: f32[2,1,1024], index: 1, kind: input, shape index: {}, may-alias: {1,2}]   ;;  %s188_s2 = inlined_call_operand.vmem [shape: f32[2,1,1024], index: 2, kind: output, shape index: {}, may-alias: {1,2}]  }
   0x1   :  { %s7_s11 = sshll.u32 %s186_s0, 4  ;;  %s8_s11 = int_to_ptr.vmem [resolvable:$true] %s7_s11 }
   0x2   :  { %s131_s12 = scalar_lea.vmem %s8_s11, 16  ;;  %p136_p1 = scmp.lt.s32.totalorder %s8_s11, %s8_s11 }
   0x3   :  { %p132_p0 = scmp.ne.s32.totalorder %s8_s11, %s131_s12  ;;  %p137_p2 = scmp.lt.s32.totalorder %s131_s12, %s131_s12 }
   0x5   :  { %p138_p3 = por %p137_p2, %p136_p1 }
   0x7   :  { %p139_p4 = pnand %p138_p3, %p132_p0 }
   0x9   :  { %142 = shalt.err (!%p139_p4)  }
   0xa   :  { %s163_s13 = smov [#allocation5]  }
   0xb   :  { %10 = dma.vmem_to_smem %s8_s11, 16, %s163_s13, [#allocation4] }
   0xc   :  { %151 = dma.done.wait [#allocation4], 16 }
   0xd   :  { %152 = vsyncadd [#allocation4], 4294967280 }
   0xe   :  { %12 = sfence }
   0xf   :  { %s155_s1 = smov 0   ;;  %s159_s14 = smov 0  }
  0x10 LB: > { %s24_s0 = sadd.s32 1, %s157_s1  ;;  %s28_s15 = sld [smem:[#allocation5 + %s157_s1]]  ;;  %s161_s14 = sphi %s159_s14, %s18_s14   ;;  %s157_s1 = sphi %s155_s1, %s156_s1  }
  0x11   : > { %p26_p5 = scmp.ge.s32.totalorder %s24_s0, 2 }
  0x13   : > { %s190_s0 = smov (%p26_p5, %s24_s0), 0 }
  0x16   : > { %p110_p6 = scmp.eq.s32.totalorder %s28_s15, 0 }
  0x17   : > { %s111_s16 = sshll.u32 (!%p110_p6), %s157_s1, 3  ;;  %v164_v0 = vmov (!%p110_p6), 0.0  }
  0x18   : > { %32 = sbr.rel (%p110_p6) target bundleno = 34 (0x22), region = 12  ;;  %s37_s19 = scalar_lea.vmem (!%p110_p6), %s188_s2, %s111_s16 }
  0x19   : > { %71 = vst [vmem:[%s37_s19] sm:$0xff] (!%p110_p6), %v164_v0 }
  0x1f   : > { %79 = vsyncadd [#allocation3], 128 }
  0x20   : > { %153 = dma.done.wait [#allocation3], 128 }
  0x21   : > { %154 = vsyncadd [#allocation3], 4294967168 }
  0x22 PF: > { %s18_s14 = sadd.s32 1, %s161_s14   ;;  %s156_s1 = smov %s190_s0  }
  0x23   : > { %p15_p7 = scmp.ge.s32.totalorder %s18_s14, 2  }
  0x25   :  { %17 = sbr.rel (!%p15_p7) target bundleno = 16 (0x10), region = 66 }
  0x2c   :  { %84 = vsyncmov [#allocation3] }
  0x2f   :  { %s85_s20 = vpop.sfrf %84 }
  0x30   :  { %p112_p8 = scmp.ne.s32.totalorder %s85_s20, 0 }
  0x32   :  { %89 = shalt.err (%p112_p8)  }

</bundles_post_ra>
